<compile_context>
chip_gen: v7x
topology: tpu7x:2x2x1
jax: 0.10.0
libtpu: 0.0.40
codegen_flags: <defaults>
</compile_context>

<pallas_src>
import functools

import jax
import jax.numpy as jnp
from jax.experimental import pallas as pl
from jax.experimental.pallas import tpu as pltpu

_LANE = 128
_SUBLANE = 8

# 8192 rows x 128 lanes x 4 B = 4 MiB per f32 input buffer (8 MiB double
# buffered) -> ~HBM-roofline block size, safe under every chip's default
# scoped-VMEM limit.
_MAX_BLOCK_ROWS = 8192


def _cdiv(a, b):
    return -(-a // b)


@functools.lru_cache(maxsize=1)
def _num_tensorcores_per_chip():
    """2 on multi-TensorCore chips (v7x / v4 / v5p), else 1 (v5e / v6e)."""
    try:
        kind = jax.devices()[0].device_kind.lower()
    except Exception:  # pragma: no cover - defensive
        return 1
    for marker in ("v7", "v4", "v5p", "v5 p"):
        if marker in kind:
            return 2
    return 1


def _plan(rows):
    """Static tiling plan for a (rows, 128) input."""
    rows8 = _cdiv(rows, _SUBLANE) * _SUBLANE
    block_rows = min(_MAX_BLOCK_ROWS, rows8)
    n_blocks = _cdiv(rows8, block_rows)
    hw_cores = _num_tensorcores_per_chip()
    num_cores = hw_cores if (hw_cores > 1 and n_blocks >= 2) else 1
    blocks_per_core = _cdiv(n_blocks, num_cores)
    return block_rows, num_cores, blocks_per_core


def _make_gan_bce_sums_kernel(n_elems, block_rows, blocks_per_core, num_cores,
                              low_precision_transcendentals):
    """Kernel producing per-core (2, 8, 128) partial sums.

    Channel 0 accumulates softplus(x), channel 1 accumulates x, both as
    sublane/lane-wise f32 partial sums (final reduction happens on host).
    """
    block_elems = block_rows * _LANE
    grid_elems = num_cores * blocks_per_core * block_elems
    needs_mask = grid_elems != n_elems  # static

    def _terms(x_native):
        xf = x_native.astype(jnp.float32)
        if low_precision_transcendentals and x_native.dtype != jnp.float32:
            # Narrow-dtype transcendentals: halves EUP work on bf16-capable
            # EUPs (v6e/v7x). max/add/accumulate stay f32.
            t = jnp.log1p(jnp.exp(-jnp.abs(x_native))).astype(jnp.float32)
        else:
            t = jnp.log1p(jnp.exp(-jnp.abs(xf)))
        sp = jnp.maximum(xf, 0.0) + t
        return sp, xf

    def _accumulate(o_ref, sp, xv):
        # (block_rows,128) -> (block_rows/8, 8, 128): tile-preserving reshape,
        # then a sublane-preserving reduction into one dense vreg each.
        sp8 = sp.reshape(-1, _SUBLANE, _LANE).sum(axis=0)
        x8 = xv.reshape(-1, _SUBLANE, _LANE).sum(axis=0)
        # Single fused read-modify-write of the resident accumulator block.
        o_ref[...] += jnp.stack([sp8, x8])[None]

    def kernel(x_ref, o_ref):
        c = pl.program_id(0)
        i = pl.program_id(1)

        @pl.when(i == 0)
        def _():
            o_ref[...] = jnp.zeros_like(o_ref)

        x = x_ref[...]

        if not needs_mask:
            # Fully aligned input: no masking code compiled at all.
            sp, xf = _terms(x)
            _accumulate(o_ref, sp, xf)
        else:
            block_idx = c * blocks_per_core + i
            in_bounds = (block_idx + 1) * block_elems <= n_elems

            @pl.when(in_bounds)
            def _():
                sp, xf = _terms(x)
                _accumulate(o_ref, sp, xf)

            @pl.when(jnp.logical_not(in_bounds))
            def _():
                # Ragged (or fully out-of-bounds) block: exact element mask.
                row = jax.lax.broadcasted_iota(jnp.int32, (block_rows, _LANE), 0)
                lane = jax.lax.broadcasted_iota(jnp.int32, (block_rows, _LANE), 1)
                gidx = (block_idx * block_rows + row) * _LANE + lane
                mask = gidx < n_elems
                sp, xf = _terms(x)
                _accumulate(o_ref,
                            jnp.where(mask, sp, 0.0),
                            jnp.where(mask, xf, 0.0))

    return kernel


def _gan_bce_sums(x, low_precision_transcendentals=None):
    """One HBM pass over x. Returns (sum(softplus(x)), sum(x), n).

    mean BCEWithLogits against a constant target t follows by linearity:
        loss(t) = (sum(softplus(x)) - t * sum(x)) / n
    """
    n = int(x.size)
    if low_precision_transcendentals is None:
        low_precision_transcendentals = jnp.dtype(x.dtype).itemsize < 4

    rows = _cdiv(n, _LANE)
    x_flat = x.reshape(-1)
    if rows * _LANE != n:
        # Rare: element count not a multiple of 128 lanes. Pad only to the
        # next lane boundary; padded elements are masked out exactly in-kernel.
        x_flat = jnp.pad(x_flat, (0, rows * _LANE - n))
    x2d = x_flat.reshape(rows, _LANE)

    block_rows, num_cores, blocks_per_core = _plan(rows)

    kernel = _make_gan_bce_sums_kernel(
        n, block_rows, blocks_per_core, num_cores, low_precision_transcendentals)

    out = pl.pallas_call(
        kernel,
        out_shape=jax.ShapeDtypeStruct((num_cores, 2, _SUBLANE, _LANE),
                                       jnp.float32),
        grid_spec=pltpu.PrefetchScalarGridSpec(
            num_scalar_prefetch=0,
            grid=(num_cores, blocks_per_core),
            in_specs=[
                pl.BlockSpec(
                    (block_rows, _LANE),
                    lambda c, i: (c * blocks_per_core + i, 0),
                ),
            ],
            out_specs=pl.BlockSpec(
                (1, 2, _SUBLANE, _LANE),
                lambda c, i: (c, 0, 0, 0),
            ),
        ),
        compiler_params=pltpu.CompilerParams(
            dimension_semantics=("parallel", "arbitrary")),
        cost_estimate=pl.CostEstimate(
            flops=8 * n,
            transcendentals=2 * n,
            bytes_accessed=n * jnp.dtype(x.dtype).itemsize
            + num_cores * 2 * _SUBLANE * _LANE * 4,
        ),
    )(x2d)

    sums = jnp.sum(out, axis=(0, 2, 3))          # (2,) f32
    return sums[0], sums[1], n


class GANLoss:
    """JAX/Pallas port of the PyTorch GANLoss module (gan_type='vanilla')."""

    def __init__(self, gan_type='vanilla', real_label_val=1.0,
                 fake_label_val=0.0, loss_weight=0.005):
        if gan_type != 'vanilla':
            # TODO(synk): only the default 'vanilla' (BCEWithLogits) branch is
            # ported; wgan / wgan_softplus / hinge are not implemented here.
            raise NotImplementedError(gan_type)
        self.gan_type = gan_type
        self.loss_weight = loss_weight
        self.real_label_val = real_label_val
        self.fake_label_val = fake_label_val

    @staticmethod
    def _loss_from_sums(sp_sum, x_sum, n, target_val):
        return (sp_sum - jnp.float32(target_val) * x_sum) / n

    def __call__(self, input, target_is_real, is_disc=False):
        target_val = self.real_label_val if target_is_real else self.fake_label_val
        sp_sum, x_sum, n = _gan_bce_sums(input)
        loss = self._loss_from_sums(sp_sum, x_sum, n, target_val)
        return loss if is_disc else loss * self.loss_weight

    def real_and_fake_losses(self, input, is_disc=True):
        """Losses against both real and fake targets from a single HBM pass."""
        sp_sum, x_sum, n = _gan_bce_sums(input)
        loss_real = self._loss_from_sums(sp_sum, x_sum, n, self.real_label_val)
        loss_fake = self._loss_from_sums(sp_sum, x_sum, n, self.fake_label_val)
        if not is_disc:
            loss_real = loss_real * self.loss_weight
            loss_fake = loss_fake * self.loss_weight
        return loss_real, loss_fake


def _reference(x, target_val, loss_weight, is_disc):
    x = x.astype(jnp.float32)
    t = jnp.full_like(x, target_val)
    per = jnp.maximum(x, 0.0) - x * t + jnp.log1p(jnp.exp(-jnp.abs(x)))
    loss = jnp.mean(per)
    return loss if is_disc else loss * loss_weight


if __name__ == "__main__":
    gan_loss = GANLoss('vanilla', real_label_val=1.0,
                       fake_label_val=0.0, loss_weight=0.005)

    # Discriminator-logit-like input, NCHW (same layout as PyTorch).
    key = jax.random.PRNGKey(0)
    x = jax.random.normal(key, (2, 4, 16, 16), dtype=jnp.float32) * 2.0

    # Generator-side loss (is_disc=False -> scaled by loss_weight).
    loss_g = gan_loss(x, target_is_real=True, is_disc=False)
    # Discriminator-side real+fake losses from one HBM pass (fused path).
    loss_d_real, loss_d_fake = gan_loss.real_and_fake_losses(x, is_disc=True)
    jax.block_until_ready((loss_g, loss_d_real, loss_d_fake))

    ref_g = _reference(x, 1.0, 0.005, False)
    ref_dr = _reference(x, 1.0, 0.005, True)
    ref_df = _reference(x, 0.0, 0.005, True)
    assert jnp.allclose(loss_g, ref_g, rtol=1e-5, atol=1e-6), (loss_g, ref_g)
    assert jnp.allclose(loss_d_real, ref_dr, rtol=1e-5, atol=1e-6), (loss_d_real, ref_dr)
    assert jnp.allclose(loss_d_fake, ref_df, rtol=1e-5, atol=1e-6), (loss_d_fake, ref_df)

    # Awkward (non multiple of 128) size exercises the exact in-kernel
    # element mask on the ragged block.
    x_odd = jax.random.normal(jax.random.PRNGKey(1), (2, 3, 11, 13),
                              dtype=jnp.float32)
    l_odd = gan_loss(x_odd, target_is_real=False, is_disc=True)
    assert jnp.allclose(l_odd, _reference(x_odd, 0.0, 0.005, True),
                        rtol=1e-5, atol=1e-6), l_odd

    # bf16 input stays bf16 in HBM; default path uses bf16 transcendentals
    # (EUP-friendly on v6e/v7x) -> compare at bf16-level tolerance.
    x_bf16 = (jax.random.normal(jax.random.PRNGKey(2), (2, 4, 16, 16)) * 2.0
              ).astype(jnp.bfloat16)
    l_bf16 = gan_loss(x_bf16, target_is_real=True, is_disc=True)
    assert jnp.allclose(l_bf16, _reference(x_bf16, 1.0, 0.005, True),
                        rtol=1e-2, atol=1e-2), l_bf16

    # Same bf16 input with full-f32 transcendentals: tight tolerance check of
    # the baseline math path.
    sp_hi, xs_hi, n_hi = _gan_bce_sums(x_bf16, low_precision_transcendentals=False)
    l_bf16_hi = (sp_hi - 1.0 * xs_hi) / n_hi
    assert jnp.allclose(l_bf16_hi, _reference(x_bf16, 1.0, 0.005, True),
                        rtol=1e-5, atol=1e-6), l_bf16_hi

    # Larger input exercises the multi-block pipelined grid, the ragged-block
    # masking path, and (on multi-TC chips) the 2-way parallel core axis.
    x_big = jax.random.normal(jax.random.PRNGKey(3), (1, 1, 1024, 1200),
                              dtype=jnp.float32)
    l_big = gan_loss(x_big, target_is_real=True, is_disc=True)
    assert jnp.allclose(l_big, _reference(x_big, 1.0, 0.005, True),
                        rtol=1e-4, atol=1e-5), l_big

    jax.block_until_ready((l_odd, l_bf16, l_bf16_hi, l_big))
    print("KERNEL_OK")
</pallas_src>

<mosaic_0001>
module attributes {stable_mosaic.version = 11 : i64} {
  func.func @kernel(%arg0: i32, %arg1: i32, %arg2: memref<16x128xf32, #tpu.memory_space<vmem>>, %arg3: memref<1x2x8x128xf32, #tpu.memory_space<vmem>>) attributes {dimension_semantics = [#tpu.dimension_semantics<parallel>, #tpu.dimension_semantics<arbitrary>], iteration_bounds = array<i64: 1, 1>, scalar_prefetch = 0 : i64, scratch_operands = 0 : i64, tpu.core_type = #tpu.core_type<tc>, window_params = [{transform_indices = @transform_0, window_bounds = array<i64: 16, 128>}, {transform_indices = @transform_1, window_bounds = array<i64: 1, 2, 8, 128>}]} {
    %c0_i32 = arith.constant 0 : i32
    %0 = arith.cmpi eq, %arg1, %c0_i32 : i32
    %1 = arith.extui %0 : i1 to i32
    %c0_i32_0 = arith.constant 0 : i32
    %2 = arith.cmpi ne, %1, %c0_i32_0 : i32
    scf.if %2 {
      %cst_13 = arith.constant 0.000000e+00 : f32
      %23 = vector.broadcast %cst_13 : f32 to vector<1x2x8x128xf32>
      %c0_14 = arith.constant 0 : index
      %c0_15 = arith.constant 0 : index
      %c0_16 = arith.constant 0 : index
      %c0_17 = arith.constant 0 : index
      %24 = vector.load %arg3[%c0_14, %c0_15, %c0_16, %c0_17] : memref<1x2x8x128xf32, #tpu.memory_space<vmem>>, vector<1x2x8x128xf32>
      tpu.vector_store %arg3[%c0_14, %c0_15, %c0_16, %c0_17], %23 {strides = array<i32>} : memref<1x2x8x128xf32, #tpu.memory_space<vmem>>, vector<1x2x8x128xf32>,
    } else {
    }
    %c0 = arith.constant 0 : index
    %c0_1 = arith.constant 0 : index
    %3 = vector.load %arg2[%c0, %c0_1] : memref<16x128xf32, #tpu.memory_space<vmem>>, vector<16x128xf32>
    %4 = math.absf %3 : vector<16x128xf32>
    %cst = arith.constant 0.000000e+00 : f32
    %5 = vector.broadcast %cst : f32 to vector<16x128xf32>
    %6 = arith.subf %5, %4 : vector<16x128xf32>
    %7 = math.exp %6 : vector<16x128xf32>
    %8 = math.log1p %7 : vector<16x128xf32>
    %cst_2 = arith.constant 0.000000e+00 : f32
    %9 = vector.broadcast %cst_2 : f32 to vector<16x128xf32>
    %10 = arith.maximumf %3, %9 : vector<16x128xf32>
    %11 = arith.addf %10, %8 : vector<16x128xf32>
    %12 = vector.shape_cast %11 : vector<16x128xf32> to vector<2x8x128xf32>
    %cst_3 = arith.constant dense<0.000000e+00> : vector<8x128xf32>
    %13 = vector.multi_reduction <add>, %12, %cst_3 [0] : vector<2x8x128xf32> to vector<8x128xf32>
    %14 = vector.shape_cast %3 : vector<16x128xf32> to vector<2x8x128xf32>
    %cst_4 = arith.constant dense<0.000000e+00> : vector<8x128xf32>
    %15 = vector.multi_reduction <add>, %14, %cst_4 [0] : vector<2x8x128xf32> to vector<8x128xf32>
    %c0_5 = arith.constant 0 : index
    %c0_6 = arith.constant 0 : index
    %c0_7 = arith.constant 0 : index
    %c0_8 = arith.constant 0 : index
    %16 = vector.load %arg3[%c0_5, %c0_6, %c0_7, %c0_8] : memref<1x2x8x128xf32, #tpu.memory_space<vmem>>, vector<1x2x8x128xf32>
    %17 = vector.shape_cast %13 : vector<8x128xf32> to vector<1x8x128xf32>
    %18 = vector.shape_cast %15 : vector<8x128xf32> to vector<1x8x128xf32>
    %19 = tpu.concatenate %17, %18 in 0 : vector<1x8x128xf32>, vector<1x8x128xf32> -> vector<2x8x128xf32>
    %20 = vector.shape_cast %19 : vector<2x8x128xf32> to vector<1x2x8x128xf32>
    %21 = arith.addf %16, %20 : vector<1x2x8x128xf32>
    %c0_9 = arith.constant 0 : index
    %c0_10 = arith.constant 0 : index
    %c0_11 = arith.constant 0 : index
    %c0_12 = arith.constant 0 : index
    %22 = vector.load %arg3[%c0_9, %c0_10, %c0_11, %c0_12] : memref<1x2x8x128xf32, #tpu.memory_space<vmem>>, vector<1x2x8x128xf32>
    tpu.vector_store %arg3[%c0_9, %c0_10, %c0_11, %c0_12], %21 {strides = array<i32>} : memref<1x2x8x128xf32, #tpu.memory_space<vmem>>, vector<1x2x8x128xf32>,
    return
  }
  func.func @transform_0(%arg0: i32, %arg1: i32) -> (i32, i32) {
    %c1_i32 = arith.constant 1 : i32
    %0 = arith.muli %arg0, %c1_i32 : i32
    %1 = arith.addi %0, %arg1 : i32
    %c0_i32 = arith.constant 0 : i32
    %c0_i32_0 = arith.constant 0 : i32
    return %1, %c0_i32 : i32, i32
  }
  func.func @transform_1(%arg0: i32, %arg1: i32) -> (i32, i32, i32, i32) {
    %c0_i32 = arith.constant 0 : i32
    %c0_i32_0 = arith.constant 0 : i32
    %c0_i32_1 = arith.constant 0 : i32
    %c0_i32_2 = arith.constant 0 : i32
    return %arg0, %c0_i32, %c0_i32_0, %c0_i32_1 : i32, i32, i32, i32
  }
}

</mosaic_0001>

<bundles_post_ra>
// kernel: tpu_custom_call.1
= control target key start
LH: loop header
LB: loop body
LE: loop exit
PB: predicated region body
PF: predicated region fallthrough
CT: control target
= control target key end

     0   :  { %6 = vsyncpa [#allocation3], 0  ;;  %s197_s0 = inlined_call_operand.hbm [shape: f32[16,128], index: 0, kind: input, shape index: {}]   ;;  %s198_s1 = inlined_call_operand.hbm [shape: f32[1,2,8,128], index: 1, kind: output, shape index: {}]  }
   0x1   :  { %7 = vsyncpa [#allocation4], 0  ;;  %s153_s6 = smov [#allocation2]   ;;  %s105_s10 = scalar_lea.hbm %s197_s0, 256 }
   0x2   :  { %s17_s7 = sshll.u32 %s153_s6, 4  ;;  %p106_p0 = scmp.ne.s32.totalorder %s197_s0, %s105_s10  ;;  %s18_s7 = int_to_ptr.vmem [resolvable:$true] %s17_s7 }
   0x3   :  { %p109_p1 = scmp.lt.u32.totalorder %s105_s10, %s197_s0 }
   0x5   :  { %p111_p2 = pnand %p109_p1, %p106_p0 }
   0x7   :  { %114 = shalt.err (!%p111_p2)
}
   0x8   :  { %s115_s15 = scalar_lea.vmem %s18_s7, 256  ;;  %p120_p4 = scmp.lt.s32.totalorder %s18_s7, %s18_s7 }
   0x9   :  { %p116_p3 = scmp.ne.s32.totalorder %s18_s7, %s115_s15  ;;  %p121_p5 = scmp.lt.s32.totalorder %s115_s15, %s115_s15 }
   0xb   :  { %p122_p6 = por %p121_p5, %p120_p4 }
   0xd   :  { %p123_p7 = pnand %p122_p6, %p116_p3 }
   0xf   :  { %126 = shalt.err (!%p123_p7)
}
  0x10   :  { %s154_s16 = smov 128   ;;  %s155_s17 = smov 8  }
  0x11   :  { %23 = dma.hbm_to_vmem [thread:$0]  %s197_s0, 256, %s18_s7, [#allocation3], %s154_s16, %s154_s16, %s155_s17  }
  0x12   :  { %149 = dma.done.wait [#allocation3], 256  }
  0x13   :  { %150 = vsyncadd [#allocation3], 4294967040  ;;  %v35_v0 = vld [vmem:[#allocation2] sm:$0xff]  ;;  %v36_v1 = vld [vmem:[#allocation2 + $0x8] sm:$0xff]  ;;  %s156_s0 = smov [#allocation5]  }
  0x14   :  { %v37_v2 = vand.u32 2147483647, %v35_v0  ;;  %v38_v3 = vand.u32 2147483647, %v36_v1  ;;  %v68_v4 = vadd.f32 %v36_v1, %v35_v0  ;;  %v63_v22 = vmax.f32 %v35_v0, 0.0  ;;  %s80_s20 = sshll.u32 %s156_s0, 4  ;;  %s81_s20 = int_to_ptr.vmem [resolvable:$true] %s80_s20 }
  0x15   :  { %v64_v25 = vmax.f32 %v36_v1, 0.0  ;;  %s127_s21 = scalar_lea.vmem %s81_s20, 256  ;;  %p132_p9 = scmp.lt.s32.totalorder %s81_s20, %s81_s20 }
  0x16   :  { %v39_v5 = vsub.f32 0.0, %v37_v2  ;;  %v40_v6 = vsub.f32 0.0, %v38_v3  ;;  %74 = vst [vmem:[#allocation5 + $0x8] sm:$0xff] %v68_v4  ;;  %p128_p8 = scmp.ne.s32.totalorder %s81_s20, %s127_s21  ;;  %p133_p10 = scmp.lt.s32.totalorder %s127_s21, %s127_s21 }
  0x18   :  { %v41_v7 = vmul.f32 1.442695, %v39_v5  ;;  %v43_v8 = vmul.f32 1.442695, %v40_v6  ;;  %p134_p11 = por %p133_p10, %p132_p9 }
  0x1a   :  { %97 = vpow2.f32 %v41_v7  ;;  %p135_p12 = pnand %p134_p11, %p128_p8 }
  0x1b   :  { %99 = vpow2.f32 %v43_v8 }
  0x24   :  { %v98_v9 = vpop.eup %97 }
  0x25   :  { %v100_v10 = vpop.eup %99  ;;  %v45_v11 = vadd.f32 1.0, %v98_v9  ;;  %v48_v13 = vmul.f32 -0.5, %v98_v9  ;;  %v51_v16 = vand.u32 2147483647, %v98_v9 }
  0x26   :  { %v54_v12 = vadd.f32 1.0, %v100_v10  ;;  %v57_v14 = vmul.f32 -0.5, %v100_v10  ;;  %v60_v18 = vand.u32 2147483647, %v100_v10 }
  0x27   :  { %101 = vlog2.f32 %v45_v11  ;;  %v49_v15 = vadd.f32 1.0, %v48_v13  ;;  %vm52_vm0 = vcmp.lt.f32.partialorder %v51_v16, 0.0004427343 }
  0x28   :  { %103 = vlog2.f32 %v54_v12  ;;  %v58_v17 = vadd.f32 1.0, %v57_v14  ;;  %vm61_vm1 = vcmp.lt.f32.partialorder %v60_v18, 0.0004427343 }
  0x29   :  { %v50_v19 = vmul.f32 %v98_v9, %v49_v15 }
  0x2a   :  { %v59_v21 = vmul.f32 %v100_v10, %v58_v17 }
  0x31   :  { %v102_v20 = vpop.eup %101 }
  0x32   :  { %v104_v23 = vpop.eup %103  ;;  %v47_v24 = vmul.f32 0.6931472, %v102_v20 }
  0x33   :  { %v56_v26 = vmul.f32 0.6931472, %v104_v23 }
  0x34   :  { %v53_v27 = vsel %vm52_vm0, %v50_v19, %v47_v24 }
  0x35   :  { %v62_v28 = vsel %vm61_vm1, %v59_v21, %v56_v26  ;;  %v65_v29 = vadd.f32 %v63_v22, %v53_v27 }
  0x36   :  { %v66_v30 = vadd.f32 %v64_v25, %v62_v28 }
  0x38   :  { %v67_v31 = vadd.f32 %v66_v30, %v65_v29 }
  0x3a   :  { %73 = vst [vmem:[#allocation5] sm:$0xff] %v67_v31 }
  0x3b   :  { %138 = shalt.err (!%p135_p12)
}
  0x3c   :  { %s139_s24 = scalar_lea.hbm %s198_s1, 256 }
  0x3d   :  { %p140_p13 = scmp.ne.s32.totalorder %s198_s1, %s139_s24  ;;  %p143_p0 = scmp.lt.u32.totalorder %s139_s24, %s198_s1 }
  0x3f   :  { %p145_p1 = pnand %p143_p0, %p140_p13 }
  0x41   :  { %148 = shalt.err (!%p145_p1)
}
  0x42   :  { %86 = dma.vmem_to_hbm [thread:$0]  %s81_s20, 256, %s198_s1, [#allocation4], %s154_s16, %s154_s16, %s155_s17  }
  0x43   :  { %151 = dma.done.wait [#allocation4], 256  }
  0x44   :  { %152 = vsyncadd [#allocation4], 4294967040 }
  0x45   :  { %90 = vsyncpa [#allocation3], 1 }
  0x46   :  { %91 = vsyncpa [#allocation4], 1 }

</bundles_post_ra>
